<compile_context>
chip_gen: v6e
topology: v6e:2x2x1
jax: 0.10.0
libtpu: 0.0.40
codegen_flags: <defaults>
</compile_context>

<pallas_src>
import functools

import jax
import jax.numpy as jnp
from jax.experimental import pallas as pl
from jax.experimental.pallas import tpu as pltpu


def _round_up(x: int, n: int) -> int:
    return ((x + n - 1) // n) * n


@functools.lru_cache(maxsize=1)
def _resident_table_budget_bytes() -> int:
    """Max packed-table size we keep VMEM-resident (generation aware)."""
    try:
        vmem = pltpu.get_tpu_info().vmem_capacity_bytes
    except Exception:  # pragma: no cover - conservative (v7x has 64 MiB)
        vmem = 64 * 1024 * 1024
    # Pallas may double-buffer even the resident block; leave room for the
    # idx/out tiles and the default scratch. 16 MiB cap keeps us safe on v7x.
    return min(vmem // 5, 16 * 1024 * 1024)


# ---------------------------------------------------------------------------
# FAST PATH kernel: VMEM-resident packed table + multi-hot MXU gather.
# ---------------------------------------------------------------------------
def _onehot_gather_kernel(idx_ref, tbl_ref, out_ref):
    """Gather r_block*pack embedding rows with one MXU matmul.

    idx_ref : (r_block, pack) int32 — column p holds item ids already offset
              by p*n_items so they address the p-th diagonal block of tbl_ref.
    tbl_ref : (pack*n_items, pack*E) — block-diagonal packed table, resident
              in VMEM (constant index_map => fetched once, never re-DMA'd).
    out_ref : (r_block, pack*E)      — lane-dense output tile; packed row j is
              concat_p(table[id[j*pack + p]]).
    """
    r = out_ref.shape[0]
    vpk = tbl_ref.shape[0]
    idx = idx_ref[...]                                            # (r, pack)
    cols = jax.lax.broadcasted_iota(jnp.int32, (r, vpk), 1)       # lane iota
    hot = cols == idx[:, 0:1]
    for p in range(1, idx.shape[1]):
        hot = jnp.logical_or(hot, cols == idx[:, p : p + 1])
    # Multi-hot (r, vpk) @ packed table (vpk, pack*E) -> (r, pack*E).
    # HIGHEST precision => exact f32 gather (no bf16 rounding of the rows).
    out_ref[...] = jnp.dot(
        hot.astype(tbl_ref.dtype),
        tbl_ref[...],
        precision=jax.lax.Precision.HIGHEST,
        preferred_element_type=jnp.float32,
    ).astype(out_ref.dtype)


def _gather_resident(table, idx_flat):
    v, e = table.shape
    m = idx_flat.shape[0]
    dtype = table.dtype
    isz = dtype.itemsize

    # Pack `pack` consecutive output rows into one 128-lane packed row so the
    # stores and HBM writeback are lane-dense (unmasked vst).
    pack = 128 // e if (e < 128 and 128 % e == 0) else 1

    rows_total = max(1, -(-m // pack))                 # packed rows needed
    r_block = min(512, _round_up(rows_total, 8))       # packed rows per step
    n_blocks = -(-rows_total // r_block)
    rows_pad = n_blocks * r_block
    m_pad = rows_pad * pack

    # Clamp ids (avoid a raw HBM fault on bad input) and pad with id 0.
    idx = jnp.clip(idx_flat, 0, v - 1)
    idx = jnp.pad(idx, (0, m_pad - m))
    # Column p selects from diagonal block p of the packed table.
    idx2d = idx.reshape(rows_pad, pack) + jnp.arange(pack, dtype=jnp.int32) * v

    # Block-diagonal packed table: rows [p*v,(p+1)*v), cols [p*e,(p+1)*e).
    if pack == 1:
        tbl_pack = table
    else:
        tbl_pack = jnp.zeros((pack * v, pack * e), dtype)
        for p in range(pack):
            tbl_pack = tbl_pack.at[p * v : (p + 1) * v, p * e : (p + 1) * e].set(table)

    vpk, epk = pack * v, pack * e
    tbl_bytes = vpk * epk * isz
    vmem_limit = min(48 * 1024 * 1024,
                     max(32 * 1024 * 1024, 4 * tbl_bytes + 8 * 1024 * 1024))

    out = pl.pallas_call(
        _onehot_gather_kernel,
        out_shape=jax.ShapeDtypeStruct((rows_pad, epk), dtype),
        grid=(n_blocks,),
        in_specs=[
            pl.BlockSpec((r_block, pack), lambda i: (i, 0)),
            # Same block every step => VMEM-resident table, fetched once.
            pl.BlockSpec((vpk, epk), lambda i: (0, 0)),
        ],
        out_specs=pl.BlockSpec((r_block, epk), lambda i: (i, 0)),
        compiler_params=pltpu.CompilerParams(
            dimension_semantics=("parallel",),   # megacore-shardable on v7x
            vmem_limit_bytes=vmem_limit,
        ),
        cost_estimate=pl.CostEstimate(
            flops=int(2 * rows_pad * vpk * epk),
            transcendentals=0,
            bytes_accessed=int(tbl_bytes + idx2d.size * 4 + rows_pad * epk * isz),
        ),
    )(idx2d, tbl_pack)

    # Unpack the lane-dense rows back to (m, e) — pure layout plumbing.
    return out.reshape(rows_pad * pack, e)[:m]


# ---------------------------------------------------------------------------
# STREAMING FALLBACK kernel: data-dependent BlockSpec row gather from HBM
# (used only when the packed table does not fit the VMEM budget).
# ---------------------------------------------------------------------------
def _gather_row_kernel(idx_ref, row_ref, out_ref):
    del idx_ref  # lives in SMEM; consumed by the index_maps
    out_ref[...] = row_ref[...]


def _gather_streaming(table, idx_flat):
    v, e = table.shape
    m = idx_flat.shape[0]
    idx = jnp.clip(idx_flat, 0, v - 1)
    tbl3 = table.reshape(v, 1, e)
    out = pl.pallas_call(
        _gather_row_kernel,
        out_shape=jax.ShapeDtypeStruct((m, 1, e), table.dtype),
        grid_spec=pltpu.PrefetchScalarGridSpec(
            num_scalar_prefetch=1,           # ids -> SMEM before the grid
            grid=(m,),
            in_specs=[
                # data-dependent row selection; deeper pipeline to hide the
                # issue latency of the tiny per-row DMAs.
                pl.BlockSpec((1, 1, e), lambda i, ids: (ids[i], 0, 0),
                             pipeline_mode=pl.Buffered(4)),
            ],
            out_specs=pl.BlockSpec((1, 1, e), lambda i, ids: (i, 0, 0)),
        ),
        compiler_params=pltpu.CompilerParams(
            dimension_semantics=("arbitrary",),
        ),
        cost_estimate=pl.CostEstimate(
            flops=0, transcendentals=0,
            bytes_accessed=int(2 * m * e * table.dtype.itemsize),
        ),
    )(idx, tbl3)
    return out.reshape(m, e)


# ---------------------------------------------------------------------------
# Public wrapper: Pallas equivalent of ItemEncoder.forward.
# ---------------------------------------------------------------------------
def item_encoder_forward(item_embs_mu, item):
    """item_embs_mu : [n_items, E] embedding table (nn.Embedding.weight)
    item            : integer index tensor of arbitrary shape
    returns         : tensor of shape item.shape + (E,)
    """
    table = item_embs_mu
    v, e = table.shape
    idx_shape = item.shape
    idx_flat = item.reshape(-1).astype(jnp.int32)
    m = idx_flat.shape[0]
    if m == 0:
        return jnp.zeros((*idx_shape, e), table.dtype)

    pack = 128 // e if (e < 128 and 128 % e == 0) else 1
    packed_tbl_bytes = (pack * v) * (pack * e) * table.dtype.itemsize
    if packed_tbl_bytes <= _resident_table_budget_bytes():
        out = _gather_resident(table, idx_flat)
    else:
        out = _gather_streaming(table, idx_flat)
    return out.reshape(*idx_shape, e)


if __name__ == "__main__":
    key = jax.random.PRNGKey(0)
    k_tbl, k_item, k_seq = jax.random.split(key, 3)

    n_items, edim = 24, 64
    batch, seq = 2, 8

    # nn.Embedding weight matrix
    item_embs_mu = jax.random.normal(k_tbl, (n_items, edim), dtype=jnp.float32)

    # --- 1-D index, as REST.py's ItemEncoder is called ---
    item = jax.random.randint(k_item, (batch,), 0, n_items)
    out = jax.block_until_ready(item_encoder_forward(item_embs_mu, item))
    ref = item_embs_mu[item]
    assert out.shape == (batch, edim), (out.shape, ref.shape)
    assert bool(jnp.allclose(out, ref, atol=1e-6, rtol=1e-6)), (
        f"1-D gather mismatch: max abs diff {float(jnp.max(jnp.abs(out - ref)))}"
    )

    # --- 2-D index tensor (history of item ids) — same kernel ---
    item_seq = jax.random.randint(k_seq, (batch, seq), 0, n_items)
    out_seq = jax.block_until_ready(item_encoder_forward(item_embs_mu, item_seq))
    ref_seq = item_embs_mu[item_seq]
    assert out_seq.shape == (batch, seq, edim), (out_seq.shape, ref_seq.shape)
    assert bool(jnp.allclose(out_seq, ref_seq, atol=1e-6, rtol=1e-6)), (
        f"2-D gather mismatch: max abs diff "
        f"{float(jnp.max(jnp.abs(out_seq - ref_seq)))}"
    )

    print("KERNEL_OK")
</pallas_src>

<mosaic_0001>
module attributes {stable_mosaic.version = 11 : i64} {
  func.func @_onehot_gather_kernel(%arg0: i32, %arg1: memref<8x2xi32, #tpu.memory_space<vmem>>, %arg2: memref<48x128xf32, #tpu.memory_space<vmem>>, %arg3: memref<8x128xf32, #tpu.memory_space<vmem>>) attributes {dimension_semantics = [#tpu.dimension_semantics<parallel>], iteration_bounds = array<i64: 1>, scalar_prefetch = 0 : i64, scratch_operands = 0 : i64, tpu.core_type = #tpu.core_type<tc>, window_params = [{transform_indices = @transform_0, window_bounds = array<i64: 8, 2>}, {pipeline_mode = #tpu.pipeline_mode<synchronous>, transform_indices = @transform_1, window_bounds = array<i64: 48, 128>}, {transform_indices = @transform_2, window_bounds = array<i64: 8, 128>}]} {
    %c0 = arith.constant 0 : index
    %c0_0 = arith.constant 0 : index
    %0 = vector.load %arg1[%c0, %c0_0] : memref<8x2xi32, #tpu.memory_space<vmem>>, vector<8x2xi32>
    %1 = tpu.iota {dimensions = array<i32: 1>} : vector<8x48xi32>
    %2 = vector.extract_strided_slice %0 {offsets = [0, 0], sizes = [8, 1], strides = [1, 1]} : vector<8x2xi32> to vector<8x1xi32>
    %3 = vector.broadcast %2 : vector<8x1xi32> to vector<8x48xi32>
    %4 = arith.cmpi eq, %1, %3 : vector<8x48xi32>
    %5 = vector.extract_strided_slice %0 {offsets = [0, 1], sizes = [8, 1], strides = [1, 1]} : vector<8x2xi32> to vector<8x1xi32>
    %6 = vector.broadcast %5 : vector<8x1xi32> to vector<8x48xi32>
    %7 = arith.cmpi eq, %1, %6 : vector<8x48xi32>
    %8 = arith.ori %4, %7 : vector<8x48xi1>
    %9 = arith.extui %8 : vector<8x48xi1> to vector<8x48xi32>
    %10 = arith.sitofp %9 : vector<8x48xi32> to vector<8x48xf32>
    %c0_1 = arith.constant 0 : index
    %c0_2 = arith.constant 0 : index
    %11 = vector.load %arg2[%c0_1, %c0_2] : memref<48x128xf32, #tpu.memory_space<vmem>>, vector<48x128xf32>
    %cst = arith.constant dense<0.000000e+00> : vector<8x128xf32>
    %12 = tpu.matmul %10, %11, %cst {dimension_numbers = #tpu.dot_dimension_numbers<[1], [0], [0], [1], [0, 0, 1, 1], [], []>, precision = #tpu.contract_precision<fp32>} : vector<8x48xf32>, vector<48x128xf32>, vector<8x128xf32> -> vector<8x128xf32>
    %c0_3 = arith.constant 0 : index
    %c0_4 = arith.constant 0 : index
    %13 = vector.load %arg3[%c0_3, %c0_4] : memref<8x128xf32, #tpu.memory_space<vmem>>, vector<8x128xf32>
    tpu.vector_store %arg3[%c0_3, %c0_4], %12 {strides = array<i32>} : memref<8x128xf32, #tpu.memory_space<vmem>>, vector<8x128xf32>,
    return
  }
  func.func @transform_0(%arg0: i32) -> (i32, i32) {
    %c0_i32 = arith.constant 0 : i32
    %c0_i32_0 = arith.constant 0 : i32
    return %arg0, %c0_i32 : i32, i32
  }
  func.func @transform_1(%arg0: i32) -> (i32, i32) {
    %c0_i32 = arith.constant 0 : i32
    %c0_i32_0 = arith.constant 0 : i32
    %c0_i32_1 = arith.constant 0 : i32
    return %c0_i32, %c0_i32_0 : i32, i32
  }
  func.func @transform_2(%arg0: i32) -> (i32, i32) {
    %c0_i32 = arith.constant 0 : i32
    %c0_i32_0 = arith.constant 0 : i32
    return %arg0, %c0_i32 : i32, i32
  }
}

</mosaic_0001>

<bundles_post_ra>
// kernel: tpu_custom_call.1
= control target key start
LH: loop header
LB: loop body
LE: loop exit
PB: predicated region body
PF: predicated region fallthrough
CT: control target
= control target key end

     0   :  { %7 = vsyncpa [#allocation3], 0  ;;  %s942_s0 = inlined_call_operand.vmem [shape: s32[8,2], index: 0, kind: input, shape index: {}]   ;;  %s943_s1 = inlined_call_operand.hbm [shape: f32[48,128], index: 1, kind: input, shape index: {}]   ;;  %s944_s2 = inlined_call_operand.hbm [shape: f32[8,128], index: 2, kind: output, shape index: {}]  }
   0x1   :  { %8 = vsyncpa [#allocation4], 0  ;;  %s767_s9 = smov [#allocation2]  }
   0x2   :  { %s16_s10 = sshll.u32 %s767_s9, 4  ;;  %s17_s10 = int_to_ptr.vmem [resolvable:$true] %s16_s10 }
   0x3   :  { %s731_s11 = scalar_lea.vmem %s17_s10, 768  ;;  %p736_p1 = scmp.lt.s32.totalorder %s17_s10, %s17_s10 }
   0x4   :  { %p732_p0 = scmp.ne.s32.totalorder %s17_s10, %s731_s11  ;;  %p737_p2 = scmp.lt.s32.totalorder %s731_s11, %s731_s11 }
   0x6   :  { %p738_p3 = por %p737_p2, %p736_p1 }
   0x8   :  { %p739_p4 = pnand %p738_p3, %p732_p0 }
   0xa   :  { %742 = shalt.err (!%p739_p4)
}
   0xb   :  { %s768_s12 = smov 128   ;;  %s769_s13 = smov 8  }
   0xc   :  { %22 = dma.hbm_to_vmem [thread:$0]  %s943_s1, 768, %s17_s10, [#allocation3], %s768_s12, %s768_s12, %s769_s13  }
   0xd   :  { %763 = dma.done.wait [#allocation3], 768  }
   0xe   :  { %764 = vsyncadd [#allocation3], 4294966528  ;;  %v770_v0 = vmov 0   ;;  %v771_v1 = vmov 0.0   ;;  %v26_v2 = vld [vmem:[%s942_s0] sm:$0xff]  ;;  %v45_v3 = vld [vmem:[#allocation2 + $0x28] sm:$0xff]  ;;  %v27_v40 = vlaneseq }
   0xf   :  { %721 = vset.pattern.permute.xlu0 %v770_v0  ;;  %638 = vmatprep.subr.mxu1 %v771_v1  ;;  %v44_v4 = vld [vmem:[#allocation2 + $0x20] sm:$0xff]  ;;  %v798_v5 = vand.u32 4294901760, %v45_v3  ;;  %v43_v7 = vld [vmem:[#allocation2 + $0x18] sm:$0xff]  ;;  %v42_v8 = vld [vmem:[#allocation2 + $0x10] sm:$0xff]  ;;  %vm772_vm0 = vmmov 0   ;;  %v773_v20 = vmov 1  }
  0x10   :  { %623 = vmatprep.subr.mxu0 %v771_v1  ;;  %30 = vperm.xlu0 %721, %v26_v2   ;;  %v800_v6 = vand.u32 4294901760, %v44_v4  ;;  %v41_v9 = vld [vmem:[#allocation2 + $0x8] sm:$0xff]  ;;  %v802_v10 = vand.u32 4294901760, %v43_v7  ;;  %v804_v11 = vand.u32 4294901760, %v42_v8  ;;  %v40_v13 = vld [vmem:[#allocation2] sm:$0xff]  ;;  %v28_v42 = vand.u32 127, %v27_v40 }
  0x11   :  { %v806_v12 = vand.u32 4294901760, %v41_v9  ;;  %v809_v14 = vsub.f32 %v45_v3, %v798_v5  ;;  %624 = vmatpush3.msra.mxu0 %v798_v5  ;;  %v815_v16 = vand.u32 4294901760, %v40_v13  ;;  %650 = vmatprep.mubr.msk.f32.mxu1 %vm772_vm0, %v771_v1  ;;  %vm46_vm3 = vcmask 392192   ;;  %s774_s0 = smov [#allocation5]  }
  0x12   :  { %v812_v15 = vsub.f32 %v44_v4, %v800_v6  ;;  %v818_v17 = vsub.f32 %v43_v7, %v802_v10  ;;  %v821_v18 = vsub.f32 %v42_v8, %v804_v11  ;;  %625 = vmatprep.subr.mxu0 %v771_v1  ;;  %635 = vmatprep.mubr.msk.f32.mxu0 %vm772_vm0, %v771_v1  ;;  %s568_s1 = sshll.u32 %s774_s0, 4  ;;  %s569_s1 = int_to_ptr.vmem [resolvable:$true] %s568_s1 }
  0x13   :  { %v824_v19 = vsub.f32 %v41_v9, %v806_v12  ;;  %v154_v21 = vand.u32 4294901760, %v809_v14  ;;  %v832_v23 = vsub.f32 %v40_v13, %v815_v16  ;;  %626 = vmatpush3.msra.mxu0 %v800_v6  ;;  %s743_s18 = scalar_lea.vmem %s569_s1, 128  ;;  %p748_p6 = scmp.lt.s32.totalorder %s569_s1, %s569_s1 }
  0x14   :  { %722 = vset.pattern.permute.xlu0 %v773_v20  ;;  %v161_v22 = vand.u32 4294901760, %v812_v15  ;;  %v168_v24 = vand.u32 4294901760, %v818_v17  ;;  %v175_v25 = vand.u32 4294901760, %v821_v18  ;;  %627 = vmatprep.subr.mxu0 %v771_v1  ;;  %p744_p5 = scmp.ne.s32.totalorder %s569_s1, %s743_s18  ;;  %p749_p7 = scmp.lt.s32.totalorder %s743_s18, %s743_s18 }
  0x15   :  { %34 = vperm.xlu0 %722, %v26_v2   ;;  %v155_v26 = vsub.f32 %v809_v14, %v154_v21  ;;  %v182_v28 = vand.u32 4294901760, %v824_v19  ;;  %628 = vmatpush3.msra.mxu0 %v802_v10  ;;  %v189_v33 = vand.u32 4294901760, %v832_v23 }
  0x16   :  { %v162_v27 = vsub.f32 %v812_v15, %v161_v22  ;;  %v169_v29 = vsub.f32 %v818_v17, %v168_v24  ;;  %629 = vmatprep.subr.mxu0 %v771_v1  ;;  %v176_v32 = vsub.f32 %v821_v18, %v175_v25  ;;  %p750_p8 = por %p749_p7, %p748_p6 }
  0x17   :  { %v156_v30 = vand.u32 4294901760, %v155_v26  ;;  %630 = vmatpush3.msra.mxu0 %v804_v11  ;;  %v183_v35 = vsub.f32 %v824_v19, %v182_v28  ;;  %v190_v37 = vsub.f32 %v832_v23, %v189_v33 }
  0x18   :  { %v163_v31 = vand.u32 4294901760, %v162_v27  ;;  %631 = vmatprep.subr.mxu0 %v771_v1  ;;  %v170_v34 = vand.u32 4294901760, %v169_v29  ;;  %v177_v36 = vand.u32 4294901760, %v176_v32  ;;  %p751_p9 = pnand %p750_p8, %p744_p5 }
  0x19   :  { %639 = vmatpush3.msra.mxu1 %v156_v30  ;;  %632 = vmatpush3.msra.mxu0 %v806_v12  ;;  %v184_v38 = vand.u32 4294901760, %v183_v35  ;;  %v191_v39 = vand.u32 4294901760, %v190_v37 }
  0x1a   :  { %640 = vmatprep.subr.mxu1 %v771_v1  ;;  %633 = vmatprep.subr.mxu0 %v771_v1 }
  0x1b   :  { %641 = vmatpush3.msra.mxu1 %v163_v31  ;;  %634 = vmatpush3.msra.mxu0 %v815_v16 }
  0x1c   :  { %642 = vmatprep.subr.mxu1 %v771_v1  ;;  %653 = vmatprep.subr.mxu0 %v771_v1 }
  0x1d   :  { %643 = vmatpush3.msra.mxu1 %v170_v34 }
  0x1e   :  { %644 = vmatprep.subr.mxu1 %v771_v1 }
  0x1f   :  { %645 = vmatpush3.msra.mxu1 %v177_v36 }
  0x20   :  { %646 = vmatprep.subr.mxu1 %v771_v1 }
  0x21   :  { %647 = vmatpush3.msra.mxu1 %v184_v38 }
  0x22   :  { %648 = vmatprep.subr.mxu1 %v771_v1 }
  0x23   :  { %649 = vmatpush3.msra.mxu1 %v191_v39 }
  0x24   :  { %668 = vmatprep.subr.mxu1 %v771_v1 }
  0x8b   :  { %v31_v41 = vpop.permute.xlu0 %30 }
  0x8c   :  { %vm32_vm1 = vcmp.eq.s32.totalorder %v28_v42, %v31_v41 }
  0x90   :  { %v35_v43 = vpop.permute.xlu0 %34 }
  0x91   :  { %vm36_vm2 = vcmp.eq.s32.totalorder %v28_v42, %v35_v43 }
  0x92   :  { %vm37_vm4 = vmor %vm32_vm1, %vm36_vm2 }
  0x93   :  { %v577_v44 = vsel %vm37_vm4, 1.0, %v771_v1 }
  0x94   :  { %v48_v45 = vsel %vm46_vm3, %v577_v44, 0  ;;  %651 = vmatmul.mubr.msk.f32.vlgmr.msra.gmra.mxu1 %vm46_vm3, %v577_v44 }
  0x95   :  { %v122_v46 = vsub.f32 %v48_v45, %v48_v45  ;;  %669 = vmatpush3.msra.mxu1 %v798_v5  ;;  %680 = vmatprep.mubr.msk.f32.mxu1 %vm772_vm0, %v771_v1 }
  0x96   :  { %670 = vmatprep.subr.mxu1 %v771_v1 }
  0x97   :  { %671 = vmatpush3.msra.mxu1 %v800_v6  ;;  %v123_v47 = vand.u32 4294901760, %v122_v46 }
  0x98   :  { %672 = vmatprep.subr.mxu1 %v771_v1 }
  0x99   :  { %673 = vmatpush3.msra.mxu1 %v802_v10  ;;  %v124_v48 = vsub.f32 %v122_v46, %v123_v47 }
  0x9a   :  { %674 = vmatprep.subr.mxu1 %v771_v1 }
  0x9b   :  { %675 = vmatpush3.msra.mxu1 %v804_v11  ;;  %v125_v49 = vand.u32 4294901760, %v124_v48 }
  0x9c   :  { %676 = vmatprep.subr.mxu1 %v771_v1 }
  0x9d   :  { %677 = vmatpush3.msra.mxu1 %v806_v12  ;;  %636 = vmatmul.mubr.f32.vlgmr.msra.gmra.mxu0 %v125_v49 }
  0x9e   :  { %654 = vmatpush3.msra.mxu0 %v809_v14  ;;  %678 = vmatprep.subr.mxu1 %v771_v1 }
  0x9f   :  { %655 = vmatprep.subr.mxu0 %v771_v1  ;;  %679 = vmatpush3.msra.mxu1 %v815_v16 }
  0xa0   :  { %656 = vmatpush3.msra.mxu0 %v812_v15  ;;  %681 = vmatmul.mubr.f32.vlgmr.msra.gmra.mxu1 %v123_v47 }
  0xa1   :  { %698 = vmatprep.subr.mxu1 %v771_v1  ;;  %657 = vmatprep.subr.mxu0 %v771_v1 }
  0xa2   :  { %699 = vmatpush3.msra.mxu1 %v798_v5  ;;  %658 = vmatpush3.msra.mxu0 %v818_v17 }
  0xa3   :  { %700 = vmatprep.subr.mxu1 %v771_v1  ;;  %659 = vmatprep.subr.mxu0 %v771_v1 }
  0xa4   :  { %701 = vmatpush3.msra.mxu1 %v800_v6  ;;  %660 = vmatpush3.msra.mxu0 %v821_v18 }
  0xa5   :  { %702 = vmatprep.subr.mxu1 %v771_v1  ;;  %661 = vmatprep.subr.mxu0 %v771_v1 }
  0xa6   :  { %703 = vmatpush3.msra.mxu1 %v802_v10  ;;  %662 = vmatpush3.msra.mxu0 %v824_v19 }
  0xa7   :  { %704 = vmatprep.subr.mxu1 %v771_v1  ;;  %663 = vmatprep.subr.mxu0 %v771_v1 }
  0xa8   :  { %705 = vmatpush3.msra.mxu1 %v804_v11  ;;  %664 = vmatpush3.msra.mxu0 %v832_v23 }
  0xa9   :  { %665 = vmatprep.mubr.msk.f32.mxu0 %vm772_vm0, %v771_v1  ;;  %706 = vmatprep.subr.mxu1 %v771_v1 }
  0xaa   :  { %666 = vmatmul.mubr.f32.vlgmr.msra.gmra.mxu0 %v122_v46  ;;  %683 = vmatprep.subr.mxu0 %v771_v1 }
  0xab   :  { %707 = vmatpush3.msra.mxu1 %v806_v12  ;;  %684 = vmatpush3.msra.mxu0 %v154_v21 }
  0xac   :  { %708 = vmatprep.subr.mxu1 %v771_v1  ;;  %685 = vmatprep.subr.mxu0 %v771_v1 }
  0xad   :  { %709 = vmatpush3.msra.mxu1 %v815_v16  ;;  %710 = vmatprep.mubr.msk.f32.mxu1 %vm772_vm0, %v771_v1 }
  0xae   :  { %686 = vmatpush3.msra.mxu0 %v161_v22  ;;  %711 = vmatmul.mubr.msk.f32.vlgmr.msra.gmra.mxu1 %vm46_vm3, %v577_v44 }
  0xaf   :  { %687 = vmatprep.subr.mxu0 %v771_v1  ;;  %695 = vmatprep.mubr.msk.f32.mxu0 %vm772_vm0, %v771_v1 }
  0xb0   :  { %688 = vmatpush3.msra.mxu0 %v168_v24 }
  0xb1   :  { %689 = vmatprep.subr.mxu0 %v771_v1 }
  0xb2   :  { %690 = vmatpush3.msra.mxu0 %v175_v25 }
  0xb3   :  { %691 = vmatprep.subr.mxu0 %v771_v1 }
  0xb4   :  { %692 = vmatpush3.msra.mxu0 %v182_v28 }
  0xb5   :  { %693 = vmatprep.subr.mxu0 %v771_v1 }
  0xb6   :  { %694 = vmatpush3.msra.mxu0 %v189_v33 }
  0xb7   :  { %696 = vmatmul.mubr.msk.f32.vlgmr.msra.gmra.mxu0 %vm46_vm3, %v577_v44 }
 0x154   :  { %v228_v50 = vpop.f32.mrf.mxu1 }
 0x156   :  { %v652_v51 = vpop.f32.mrf.mxu1 }
 0x15d   :  { %v127_v52 = vpop.f32.mrf.mxu0 }
 0x15e   :  { %v229_v59 = vadd.f32 %v228_v50, %v127_v52 }
 0x15f   :  { %v637_v53 = vpop.f32.mrf.mxu0 }
 0x160   :  { %v391_v54 = vpop.f32.mrf.mxu1 }
 0x162   :  { %v682_v55 = vpop.f32.mrf.mxu1 }
 0x16a   :  { %v312_v56 = vpop.f32.mrf.mxu0 }
 0x16b   :  { %v313_v61 = vadd.f32 %v312_v56, %v229_v59 }
 0x16c   :  { %v667_v57 = vpop.f32.mrf.mxu0 }
 0x16d   :  { %v392_v62 = vadd.f32 %v391_v54, %v313_v61 }
 0x16e   :  { %v557_v58 = vpop.f32.mrf.mxu1 }
 0x170   :  { %v712_v60 = vpop.f32.mrf.mxu1 }
 0x177   :  { %v480_v63 = vpop.f32.mrf.mxu0 }
 0x178   :  { %v481_v0 = vadd.f32 %v480_v63, %v392_v62 }
 0x179   :  { %v697_v1 = vpop.f32.mrf.mxu0 }
 0x17a   :  { %v558_v2 = vadd.f32 %v557_v58, %v481_v0 }
 0x17c   :  { %561 = vst [vmem:[#allocation5] sm:$0xff] %v558_v2 }
 0x17d   :  { %754 = shalt.err (!%p751_p9)
}
 0x17e   :  { %571 = dma.vmem_to_hbm [thread:$0]  %s569_s1, 128, %s944_s2, [#allocation4]  }
 0x17f   :  { %765 = dma.done.wait [#allocation4], 128  }
 0x180   :  { %766 = vsyncadd [#allocation4], 4294967168 }
 0x181   :  { %575 = vsyncpa [#allocation3], 1 }
 0x182   :  { %576 = vsyncpa [#allocation4], 1 }

</bundles_post_ra>
